<compile_context>
chip_gen: v7x
topology: tpu7x:2x2x1
jax: 0.10.0
libtpu: 0.0.40
codegen_flags: <defaults>
</compile_context>

<pallas_src>
import functools
import math

import jax
import jax.numpy as jnp
from jax.experimental import pallas as pl
from jax.experimental.pallas import tpu as pltpu


def _round_up(x, m):
    return ((x + m - 1) // m) * m


def _vmem_limit_bytes():
    """~85% of the chip's VMEM (capped at 110 MiB), with a safe fallback."""
    cap = 64 * 1024 * 1024
    try:
        info = pltpu.get_tpu_info()
        cap = int(getattr(info, "vmem_capacity_bytes", cap)) or cap
    except Exception:
        pass
    return min(int(cap * 0.85), 110 * 1024 * 1024)


def _gcn_kernel(s_ref, adj_ref, b_ref, o_ref, acc_ref, *, tk, resident):
    k = pl.program_id(1)

    @pl.when(k == 0)
    def _():
        acc_ref[...] = jnp.zeros_like(acc_ref)

    if resident:
        # support is fully VMEM-resident; slice out this k-tile (tk-aligned).
        start = pl.multiple_of(k * tk, tk)
        s = s_ref[pl.ds(start, tk), :]
    else:
        s = s_ref[...]

    # acc += adj[i, k] @ support[k]    (bf16 operands, f32 accumulation, MXU)
    acc_ref[...] += jnp.dot(adj_ref[...], s, preferred_element_type=jnp.float32)

    @pl.when(k == pl.num_programs(1) - 1)
    def _():
        # Single f32 VPU epilogue per output tile: + bias, ReLU, lane-dense store.
        o_ref[...] = jnp.maximum(acc_ref[...] + b_ref[...], 0.0).astype(o_ref.dtype)


def dense_dyn_block(x, adj, W, b, *, tm=512, tk=1024):
    """Forward of DenseDynBlock (conv='gcn'). Returns (cat([x, dense], 1), batch)."""
    N, Cin = x.shape
    Cout = W.shape[1]

    # Lane-dense output feature dim; tile/sublane-aligned node dims.
    Cout_p = _round_up(Cout, 128)
    tm = min(tm, _round_up(N, 8))      # output-row tile (sublane aligned)
    tk = min(tk, _round_up(N, 128))    # reduction tile (lane aligned for adj)
    Nm = _round_up(N, tm)              # padded output rows
    Nk = _round_up(N, tk)              # padded reduction extent

    # Hoisted support = x @ W: computed once in f32, cast to bf16 exactly once.
    support = jnp.dot(x.astype(jnp.float32), W.astype(jnp.float32))
    s_p = jnp.zeros((Nk, Cout_p), jnp.bfloat16).at[:N, :Cout].set(
        support.astype(jnp.bfloat16))

    # adj: cast/pad only when needed (padded rows/cols are zero -> exact math;
    # padded output rows evaluate to relu(bias) and are sliced off below).
    # TODO(synk): for a BW-bound kernel the producer should emit bf16 adjacency
    # directly; this cast+pad is one (fused) extra pass over adj.
    adj_b = adj if adj.dtype == jnp.bfloat16 else adj.astype(jnp.bfloat16)
    if adj_b.shape == (Nm, Nk):
        adj_p = adj_b
    else:
        adj_p = jnp.zeros((Nm, Nk), jnp.bfloat16).at[:N, :N].set(adj_b)

    b_p = jnp.zeros((1, Cout_p), jnp.float32).at[0, :Cout].set(b.astype(jnp.float32))

    # Keep support fully VMEM-resident when it fits comfortably (budget counts
    # the default double-buffer allocation, so it stays small even on v7x's
    # 64 MiB VMEM); all streaming bandwidth then goes to the dominant adj load.
    resident = (Nk * Cout_p * 2) <= (8 * 1024 * 1024)
    if resident:
        s_spec = pl.BlockSpec((Nk, Cout_p), lambda i, k: (0, 0))   # fetched once
    else:
        s_spec = pl.BlockSpec((tk, Cout_p), lambda i, k: (k, 0))   # streamed per k

    grid = (Nm // tm, Nk // tk)

    dense_p = pl.pallas_call(
        functools.partial(_gcn_kernel, tk=tk, resident=resident),
        out_shape=jax.ShapeDtypeStruct((Nm, Cout_p), x.dtype),
        grid_spec=pltpu.PrefetchScalarGridSpec(
            num_scalar_prefetch=0,
            grid=grid,
            in_specs=[
                s_spec,                                              # support
                pl.BlockSpec((tm, tk), lambda i, k: (i, k)),         # adj tile
                pl.BlockSpec((1, Cout_p), lambda i, k: (0, 0)),      # bias (resident)
            ],
            out_specs=pl.BlockSpec((tm, Cout_p), lambda i, k: (i, 0)),
            scratch_shapes=[pltpu.VMEM((tm, Cout_p), jnp.float32)],
        ),
        compiler_params=pltpu.CompilerParams(
            dimension_semantics=("parallel", "arbitrary"),
            vmem_limit_bytes=_vmem_limit_bytes(),
        ),
    )(s_p, adj_p, b_p)

    dense = dense_p[:N, :Cout]
    # DenseDynBlock: torch.cat((x, dense), 1); batch passthrough.
    # The concat stays in XLA — Cin (=8) is not lane-aligned, so fusing it into
    # the kernel would force masked stores.
    return jnp.concatenate([x, dense], axis=1), None


if __name__ == "__main__":
    key = jax.random.PRNGKey(0)
    N, Cin, Cout = 16, 8, 32  # small shapes: N nodes, in/out feature dims

    k1, k2, k3, k4 = jax.random.split(key, 4)

    # node features [N, Cin]
    x = jax.random.normal(k1, (N, Cin), dtype=jnp.float32)

    # deterministic stand-in adjacency (symmetric, self-loops, row-normalized)
    raw = jax.random.uniform(k2, (N, N)) > 0.7
    adj01 = (raw | raw.T | jnp.eye(N, dtype=bool)).astype(jnp.float32)
    adj = adj01 / jnp.sum(adj01, axis=1, keepdims=True)

    # GraphConvolution.reset_parameters(): uniform(-stdv, stdv), stdv = 1/sqrt(out)
    stdv = 1.0 / math.sqrt(Cout)
    W = jax.random.uniform(k3, (Cin, Cout), jnp.float32, minval=-stdv, maxval=stdv)
    b = jax.random.uniform(k4, (Cout,), jnp.float32, minval=-stdv, maxval=stdv)

    out, batch = dense_dyn_block(x, adj, W, b)
    out = jax.block_until_ready(out)

    # sanity check against a pure-f32 JAX reference of the same forward
    # (tolerance loosened for the bf16 adj/support operands; accumulation is f32)
    ref = jnp.concatenate([x, jnp.maximum(adj @ (x @ W) + b, 0.0)], axis=1)
    assert out.shape == (N, Cin + Cout)
    assert jnp.allclose(out[:, :Cin], x)  # passthrough half is exact
    assert jnp.allclose(out, ref, atol=3e-2, rtol=3e-2)

    print("KERNEL_OK")
</pallas_src>

<mosaic_0001>
module attributes {stable_mosaic.version = 11 : i64} {
  func.func @_gcn_kernel(%arg0: i32, %arg1: i32, %arg2: memref<128x128xbf16, #tpu.memory_space<vmem>>, %arg3: memref<16x128xbf16, #tpu.memory_space<vmem>>, %arg4: memref<1x128xf32, #tpu.memory_space<vmem>>, %arg5: memref<16x128xf32, #tpu.memory_space<vmem>>, %arg6: memref<16x128xf32, #tpu.memory_space<vmem>>) attributes {dimension_semantics = [#tpu.dimension_semantics<parallel>, #tpu.dimension_semantics<arbitrary>], iteration_bounds = array<i64: 1, 1>, scalar_prefetch = 0 : i64, scratch_operands = 1 : i64, tpu.core_type = #tpu.core_type<tc>, window_params = [{pipeline_mode = #tpu.pipeline_mode<synchronous>, transform_indices = @transform_0, window_bounds = array<i64: 128, 128>}, {transform_indices = @transform_1, window_bounds = array<i64: 16, 128>}, {pipeline_mode = #tpu.pipeline_mode<synchronous>, transform_indices = @transform_2, window_bounds = array<i64: 1, 128>}, {transform_indices = @transform_3, window_bounds = array<i64: 16, 128>}]} {
    %c0_i32 = arith.constant 0 : i32
    %0 = arith.cmpi eq, %arg1, %c0_i32 : i32
    %1 = arith.extui %0 : i1 to i32
    %c0_i32_0 = arith.constant 0 : i32
    %2 = arith.cmpi ne, %1, %c0_i32_0 : i32
    scf.if %2 {
      %cst_9 = arith.constant 0.000000e+00 : f32
      %15 = vector.broadcast %cst_9 : f32 to vector<16x128xf32>
      %c0_10 = arith.constant 0 : index
      %c0_11 = arith.constant 0 : index
      %16 = vector.load %arg6[%c0_10, %c0_11] : memref<16x128xf32, #tpu.memory_space<vmem>>, vector<16x128xf32>
      tpu.vector_store %arg6[%c0_10, %c0_11], %15 {strides = array<i32>} : memref<16x128xf32, #tpu.memory_space<vmem>>, vector<16x128xf32>,
    } else {
    }
    %c128_i32 = arith.constant 128 : i32
    %3 = arith.muli %arg1, %c128_i32 : i32
    %4 = tpu.assume_multiple %3, 128 : i32
    %5 = arith.index_cast %4 : i32 to index
    %c0 = arith.constant 0 : index
    %6 = vector.load %arg2[%5, %c0] : memref<128x128xbf16, #tpu.memory_space<vmem>>, vector<128x128xbf16>
    %c0_1 = arith.constant 0 : index
    %c0_2 = arith.constant 0 : index
    %7 = vector.load %arg6[%c0_1, %c0_2] : memref<16x128xf32, #tpu.memory_space<vmem>>, vector<16x128xf32>
    %c0_3 = arith.constant 0 : index
    %c0_4 = arith.constant 0 : index
    %8 = vector.load %arg3[%c0_3, %c0_4] : memref<16x128xbf16, #tpu.memory_space<vmem>>, vector<16x128xbf16>
    %cst = arith.constant dense<0.000000e+00> : vector<16x128xf32>
    %9 = tpu.matmul %8, %6, %cst {dimension_numbers = #tpu.dot_dimension_numbers<[1], [0], [0], [1], [0, 0, 1, 1], [], []>} : vector<16x128xbf16>, vector<128x128xbf16>, vector<16x128xf32> -> vector<16x128xf32>
    %10 = arith.addf %7, %9 : vector<16x128xf32>
    %c0_5 = arith.constant 0 : index
    %c0_6 = arith.constant 0 : index
    %11 = vector.load %arg6[%c0_5, %c0_6] : memref<16x128xf32, #tpu.memory_space<vmem>>, vector<16x128xf32>
    tpu.vector_store %arg6[%c0_5, %c0_6], %10 {strides = array<i32>} : memref<16x128xf32, #tpu.memory_space<vmem>>, vector<16x128xf32>,
    %c0_i32_7 = arith.constant 0 : i32
    %12 = arith.cmpi eq, %arg1, %c0_i32_7 : i32
    %13 = arith.extui %12 : i1 to i32
    %c0_i32_8 = arith.constant 0 : i32
    %14 = arith.cmpi ne, %13, %c0_i32_8 : i32
    scf.if %14 {
      %c0_9 = arith.constant 0 : index
      %c0_10 = arith.constant 0 : index
      %15 = vector.load %arg6[%c0_9, %c0_10] : memref<16x128xf32, #tpu.memory_space<vmem>>, vector<16x128xf32>
      %c0_11 = arith.constant 0 : index
      %c0_12 = arith.constant 0 : index
      %16 = vector.load %arg4[%c0_11, %c0_12] : memref<1x128xf32, #tpu.memory_space<vmem>>, vector<1x128xf32>
      %17 = vector.broadcast %16 : vector<1x128xf32> to vector<16x128xf32>
      %18 = arith.addf %15, %17 : vector<16x128xf32>
      %cst_13 = arith.constant 0.000000e+00 : f32
      %19 = vector.broadcast %cst_13 : f32 to vector<16x128xf32>
      %20 = arith.maximumf %18, %19 : vector<16x128xf32>
      %c0_14 = arith.constant 0 : index
      %c0_15 = arith.constant 0 : index
      %21 = vector.load %arg5[%c0_14, %c0_15] : memref<16x128xf32, #tpu.memory_space<vmem>>, vector<16x128xf32>
      tpu.vector_store %arg5[%c0_14, %c0_15], %20 {strides = array<i32>} : memref<16x128xf32, #tpu.memory_space<vmem>>, vector<16x128xf32>,
    } else {
    }
    return
  }
  func.func @transform_0(%arg0: i32, %arg1: i32) -> (i32, i32) {
    %c0_i32 = arith.constant 0 : i32
    %c0_i32_0 = arith.constant 0 : i32
    %c0_i32_1 = arith.constant 0 : i32
    return %c0_i32, %c0_i32_0 : i32, i32
  }
  func.func @transform_1(%arg0: i32, %arg1: i32) -> (i32, i32) {
    %c0_i32 = arith.constant 0 : i32
    return %arg0, %arg1 : i32, i32
  }
  func.func @transform_2(%arg0: i32, %arg1: i32) -> (i32, i32) {
    %c0_i32 = arith.constant 0 : i32
    %c0_i32_0 = arith.constant 0 : i32
    %c0_i32_1 = arith.constant 0 : i32
    return %c0_i32, %c0_i32_0 : i32, i32
  }
  func.func @transform_3(%arg0: i32, %arg1: i32) -> (i32, i32) {
    %c0_i32 = arith.constant 0 : i32
    %c0_i32_0 = arith.constant 0 : i32
    return %arg0, %c0_i32 : i32, i32
  }
}

</mosaic_0001>

<bundles_post_ra>
// kernel: tpu_custom_call.1
= control target key start
LH: loop header
LB: loop body
LE: loop exit
PB: predicated region body
PF: predicated region fallthrough
CT: control target
= control target key end

     0   :  { %8 = vsyncpa [#allocation4], 0  ;;  %s409_s0 = inlined_call_operand.hbm [shape: bf16[128,128], index: 0, kind: input, shape index: {}]   ;;  %s410_s1 = inlined_call_operand.hbm [shape: bf16[16,128], index: 1, kind: input, shape index: {}]   ;;  %s411_s2 = inlined_call_operand.vmem [shape: f32[1,128], index: 2, kind: input, shape index: {}]   ;;  %s412_s3 = inlined_call_operand.hbm [shape: f32[16,128], index: 3, kind: output, shape index: {}]  }
   0x1   :  { %9 = vsyncpa [#allocation7], 0 }
   0x2   :  { %10 = vsyncpa [#allocation5], 0  ;;  %s341_s12 = smov [#allocation3]   ;;  %s269_s16 = scalar_lea.hbm %s409_s0, 1024 }
   0x3   :  { %s16_s13 = sshll.u32 %s341_s12, 4  ;;  %p270_p0 = scmp.ne.s32.totalorder %s409_s0, %s269_s16  ;;  %s17_s13 = int_to_ptr.vmem [resolvable:$true] %s16_s13 }
   0x4   :  { %p273_p1 = scmp.lt.u32.totalorder %s269_s16, %s409_s0 }
   0x6   :  { %p275_p2 = pnand %p273_p1, %p270_p0 }
   0x8   :  { %278 = shalt.err (!%p275_p2)
}
   0x9   :  { %s279_s21 = scalar_lea.vmem %s17_s13, 1024  ;;  %p284_p4 = scmp.lt.s32.totalorder %s17_s13, %s17_s13 }
   0xa   :  { %p280_p3 = scmp.ne.s32.totalorder %s17_s13, %s279_s21  ;;  %p285_p5 = scmp.lt.s32.totalorder %s279_s21, %s279_s21 }
   0xc   :  { %p286_p6 = por %p285_p5, %p284_p4 }
   0xe   :  { %p287_p7 = pnand %p286_p6, %p280_p3 }
  0x10   :  { %290 = shalt.err (!%p287_p7)
}
  0x11   :  { %s342_s22 = smov 64   ;;  %s343_s23 = smov 4  }
  0x12   :  { %22 = dma.hbm_to_vmem [thread:$0]  %s409_s0, 1024, %s17_s13, [#allocation4], %s342_s22, %s342_s22, %s343_s23  }
  0x13   :  { %s344_s26 = smov [#allocation6]   ;;  %s291_s30 = scalar_lea.hbm %s410_s1, 128 }
  0x14   :  { %s28_s27 = sshll.u32 %s344_s26, 4  ;;  %p292_p8 = scmp.ne.s32.totalorder %s410_s1, %s291_s30  ;;  %s29_s27 = int_to_ptr.vmem [resolvable:$true] %s28_s27 }
  0x15   :  { %p295_p9 = scmp.lt.u32.totalorder %s291_s30, %s410_s1 }
  0x17   :  { %p297_p10 = pnand %p295_p9, %p292_p8 }
  0x19   :  { %300 = shalt.err (!%p297_p10)
}
  0x1a   :  { %s301_s8 = scalar_lea.vmem %s29_s27, 128  ;;  %p306_p12 = scmp.lt.s32.totalorder %s29_s27, %s29_s27 }
  0x1b   :  { %p302_p11 = scmp.ne.s32.totalorder %s29_s27, %s301_s8  ;;  %p307_p13 = scmp.lt.s32.totalorder %s301_s8, %s301_s8 }
  0x1d   :  { %p308_p0 = por %p307_p13, %p306_p12 }
  0x1f   :  { %p309_p1 = pnand %p308_p0, %p302_p11 }
  0x21   :  { %312 = shalt.err (!%p309_p1)
}
  0x22   :  { %34 = dma.hbm_to_vmem [thread:$0]  %s410_s1, 128, %s29_s27, [#allocation7], %s342_s22, %s342_s22, %s343_s23  }
  0x23   :  { %335 = dma.done.wait [#allocation4], 1024  }
  0x24   :  { %336 = vsyncadd [#allocation4], 4294966272 }
  0x25   :  { %337 = dma.done.wait [#allocation7], 128  }
  0x26   :  { %338 = vsyncadd [#allocation7], 4294967168  ;;  %v345_v0 = vmov 0.0   ;;  %vm346_vm0 = vmmov 0   ;;  %v260_v1 = vld [vmem:[#allocation3] sm:$0xff]   ;;  %v261_v2 = vld [vmem:[#allocation3 + $0x8] sm:$0xff]  }
  0x27   :  { %231 = vmatprep.subr.bf16.mxu0 %v345_v0  ;;  %247 = vmatprep.mubr.msk.bf16.mxu0 %vm346_vm0, %v345_v0  ;;  %v262_v3 = vld [vmem:[#allocation3 + $0x10] sm:$0xff]   ;;  %v263_v4 = vld [vmem:[#allocation3 + $0x18] sm:$0xff]   ;;  %v264_v5 = vld [vmem:[#allocation3 + $0x20] sm:$0xff]   ;;  %s347_s11 = smov [#allocation8]  }
  0x28   :  { %232 = vmatpush3.bf16.msra.mxu0 %v260_v1  ;;  %v265_v6 = vld [vmem:[#allocation3 + $0x28] sm:$0xff]   ;;  %v266_v7 = vld [vmem:[#allocation3 + $0x30] sm:$0xff]   ;;  %v267_v8 = vld [vmem:[#allocation3 + $0x38] sm:$0xff]   ;;  %s197_s12 = sshll.u32 %s347_s11, 4  ;;  %s198_s12 = int_to_ptr.vmem [resolvable:$true] %s197_s12 }
  0x29   :  { %233 = vmatprep.subr.bf16.mxu0 %v345_v0  ;;  %v268_v9 = vld [vmem:[#allocation6] sm:$0xff]   ;;  %s313_s13 = scalar_lea.vmem %s198_s12, 256  ;;  %p318_p3 = scmp.lt.s32.totalorder %s198_s12, %s198_s12 }
  0x2a   :  { %v221_v10 = vld [vmem:[%s411_s2] ss:$0 sm:$0xff]  ;;  %p314_p2 = scmp.ne.s32.totalorder %s198_s12, %s313_s13  ;;  %p319_p4 = scmp.lt.s32.totalorder %s313_s13, %s313_s13 }
  0x2c   :  { %234 = vmatpush3.bf16.msra.mxu0 %v261_v2  ;;  %p320_p5 = por %p319_p4, %p318_p3 }
  0x2d   :  { %235 = vmatprep.subr.bf16.mxu0 %v345_v0 }
  0x2e   :  { %p321_p6 = pnand %p320_p5, %p314_p2 }
  0x30   :  { %236 = vmatpush3.bf16.msra.mxu0 %v262_v3 }
  0x31   :  { %237 = vmatprep.subr.bf16.mxu0 %v345_v0 }
  0x34   :  { %238 = vmatpush3.bf16.msra.mxu0 %v263_v4 }
  0x35   :  { %239 = vmatprep.subr.bf16.mxu0 %v345_v0 }
  0x38   :  { %240 = vmatpush3.bf16.msra.mxu0 %v264_v5 }
  0x39   :  { %241 = vmatprep.subr.bf16.mxu0 %v345_v0 }
  0x3c   :  { %242 = vmatpush3.bf16.msra.mxu0 %v265_v6 }
  0x3d   :  { %243 = vmatprep.subr.bf16.mxu0 %v345_v0 }
  0x40   :  { %244 = vmatpush3.bf16.msra.mxu0 %v266_v7 }
  0x41   :  { %245 = vmatprep.subr.bf16.mxu0 %v345_v0 }
  0x44   :  { %246 = vmatpush3.bf16.msra.mxu0 %v267_v8 }
  0x47   :  { %248 = vmatmul.mubr.bf16.vlgmr.msra.gmra.mrb[0].mxu0 %v268_v9 }
 0x11a   :  { %v163_v11 = vpop.f32.mrb[0].mxu0 }
 0x11b   :  { %v186_v12 = vadd.f32 %v221_v10, %v163_v11  ;;  %v249_v13 = vpop.f32.mrb[1].mxu0 }
 0x11c   :  { %v166_v14 = vpop.f32.mrb[2].mxu0 }
 0x11d   :  { %v188_v15 = vmax.f32 %v186_v12, 0.0  ;;  %v187_v16 = vadd.f32 %v221_v10, %v166_v14  ;;  %v250_v17 = vpop.f32.mrb[3].mxu0 }
 0x11f   :  { %190 = vst [vmem:[#allocation8] sm:$0xff] %v188_v15  ;;  %v189_v18 = vmax.f32 %v187_v16, 0.0 }
 0x121   :  { %191 = vst [vmem:[#allocation8 + $0x8] sm:$0xff] %v189_v18 }
 0x122   :  { %324 = shalt.err (!%p321_p6)
}
 0x123   :  { %s325_s15 = scalar_lea.hbm %s412_s3, 256 }
 0x124   :  { %p326_p7 = scmp.ne.s32.totalorder %s412_s3, %s325_s15  ;;  %p329_p8 = scmp.lt.u32.totalorder %s325_s15, %s412_s3 }
 0x126   :  { %p331_p9 = pnand %p329_p8, %p326_p7 }
 0x128   :  { %334 = shalt.err (!%p331_p9)
}
 0x129   :  { %s348_s20 = smov 128   ;;  %s349_s21 = smov 8  }
 0x12a   :  { %203 = dma.vmem_to_hbm [thread:$0]  %s198_s12, 256, %s412_s3, [#allocation5], %s348_s20, %s348_s20, %s349_s21  }
 0x12b   :  { %339 = dma.done.wait [#allocation5], 256  }
 0x12c   :  { %340 = vsyncadd [#allocation5], 4294967040 }
 0x12d   :  { %207 = vsyncpa [#allocation4], 1 }
 0x12e   :  { %208 = vsyncpa [#allocation7], 1 }
 0x12f   :  { %209 = vsyncpa [#allocation5], 1 }

</bundles_post_ra>
